<compile_context>
chip_gen: v7x
topology: tpu7x:2x2x1
jax: 0.10.0
libtpu: 0.0.40
codegen_flags: <defaults>
</compile_context>

<pallas_src>
import jax
import jax.numpy as jnp
from jax.experimental import pallas as pl
from jax.experimental.pallas import tpu as pltpu

_VMEM_BUDGET_BYTES = 8 * 1024 * 1024    # double-buffered (in + out) tiles
_VMEM_LIMIT_BYTES = 32 * 1024 * 1024    # scoped limit; v7x-safe (64 MiB phys)
_HARD_CAP_BYTES = 24 * 1024 * 1024      # max acceptable min-block footprint
_SPLIT_BYTES = 2 * 1024 * 1024          # above this, force multi-step grid
_MIN_GRID_STEPS = 4                     # megacore + pipeline engagement


def _make_kernel(functional):
    def kernel(x_ref, o_ref):
        # Elementwise hot path: load the VMEM block, apply the wrapped
        # functional (any dtype widening happens here, on-chip), store back.
        o_ref[...] = functional(x_ref[...]).astype(o_ref.dtype)
    return kernel


def _row_align(dtype):
    # Sublane-packing granularity: 8 for 32-bit, 16 for 16-bit, 32 for 8-bit.
    return 8 * max(1, 4 // jnp.dtype(dtype).itemsize)


def _choose_2d(shape, n):
    """Pick a (rows, cols) view with rows * cols == n (no tail, no padding)."""
    # 1) Lane-dense: widest power-of-two (multiple of 128) dividing n exactly.
    for w in (8192, 4096, 2048, 1024, 512, 256, 128):
        if n % w == 0:
            return n // w, w
    # 2) n is not a multiple of 128: factor along the tensor's own trailing
    #    dims.  The block covers the full last dim, which lifts the
    #    128-divisibility constraint (masked stores only in the last vreg).
    cols = 1
    for d in reversed(shape):
        cols *= int(d)
        if cols >= 128:
            return n // cols, cols
    # 3) Tiny input (< 128 elements): one full-extent block.
    return 1, n


def _pick_tile_rows(rows, cols, in_bytes, out_bytes, align):
    """VMEM-budgeted row tile, forced to >=4 grid steps for multi-MiB data."""
    bytes_per_row = cols * (in_bytes + out_bytes)
    budget = max(1, _VMEM_BUDGET_BYTES // (2 * bytes_per_row))
    if rows * bytes_per_row >= _SPLIT_BYTES:
        # Keep at least _MIN_GRID_STEPS blocks so v7x's second TensorCore and
        # the DMA/compute/writeback pipeline have work to overlap.
        budget = min(budget, pl.cdiv(rows, _MIN_GRID_STEPS))
    if budget >= rows:
        return rows                      # full extent: no alignment needed
    return min(rows, max(align, (budget // align) * align))


def _apply_2d(functional, x2d, out_dtype, align):
    rows, cols = x2d.shape
    in_bytes = jnp.dtype(x2d.dtype).itemsize
    out_bytes = jnp.dtype(out_dtype).itemsize
    tile_rows = _pick_tile_rows(rows, cols, in_bytes, out_bytes, align)
    grid = (pl.cdiv(rows, tile_rows),)
    n = rows * cols

    return pl.pallas_call(
        _make_kernel(functional),
        out_shape=jax.ShapeDtypeStruct((rows, cols), out_dtype),
        grid=grid,
        in_specs=[pl.BlockSpec((tile_rows, cols), lambda i: (i, 0))],
        out_specs=pl.BlockSpec((tile_rows, cols), lambda i: (i, 0)),
        compiler_params=pltpu.CompilerParams(
            dimension_semantics=("parallel",),
            vmem_limit_bytes=_VMEM_LIMIT_BYTES,
        ),
        cost_estimate=pl.CostEstimate(
            flops=n,
            transcendentals=0,
            bytes_accessed=n * (in_bytes + out_bytes),
        ),
    )(x2d)


def functional_module_pallas(functional, x, *, out_dtype=None):
    """Apply `functional` elementwise to `x` via a Pallas TPU kernel.

    Mirrors FunctionalModule.forward(input) = functional(input) for
    elementwise, shape-preserving functionals (the av_dataset use case).
    """
    if out_dtype is None:
        # Match the functional's type promotion on this dtype (2-D probe so
        # rank-dependent promotion quirks of rank-0 arrays are avoided).
        out_dtype = jax.eval_shape(
            functional, jax.ShapeDtypeStruct((1, 1), x.dtype)).dtype
    out_dtype = jnp.dtype(out_dtype)

    orig_shape = x.shape
    n = x.size
    if n == 0:
        return jnp.zeros(orig_shape, out_dtype)

    in_bytes = jnp.dtype(x.dtype).itemsize
    out_bytes = out_dtype.itemsize
    align = max(_row_align(x.dtype), _row_align(out_dtype))

    rows, cols = _choose_2d(orig_shape, n)

    # Guard against pathological factorizations (huge indivisible last dim)
    # whose minimal block would not fit on-chip.
    min_tile = rows if rows <= align else align
    if 2 * min_tile * cols * (in_bytes + out_bytes) > _HARD_CAP_BYTES:
        # TODO(synk): rare path — padding costs one extra (narrow-dtype)
        # input pass plus an output slice pass; not hit by video shapes.
        w = 1024
        pad = (-n) % w
        x2d = jnp.pad(x.reshape(-1), (0, pad)).reshape(-1, w)
        out2d = _apply_2d(functional, x2d, out_dtype, align)
        return out2d.reshape(-1)[:n].reshape(orig_shape)

    # Contiguous row-major reshape: layout metadata only, no HBM pass.
    out2d = _apply_2d(functional, x.reshape(rows, cols), out_dtype, align)
    return out2d.reshape(orig_shape)


if __name__ == "__main__":
    root = jax.random.PRNGKey(0)
    k0, k1, k2, k3 = jax.random.split(root, 4)

    # Canonical av_dataset functional: uint8 video -> float normalization.
    # Multiply by the constant reciprocal (cheaper than divide); the widening
    # cast happens inside the kernel so the HBM-side input stays uint8.
    normalize = lambda v: v.astype(jnp.float32) * jnp.float32(1.0 / 255.0)

    # 1) Video-frame-like NCHW uint8 input: batch=2, channels=4, 16x16.
    x_u8 = jax.random.randint(
        k0, (2, 4, 16, 16), 0, 256, dtype=jnp.int32).astype(jnp.uint8)
    out = jax.block_until_ready(functional_module_pallas(normalize, x_u8))
    ref = normalize(x_u8)
    assert out.shape == ref.shape and out.dtype == ref.dtype
    assert jnp.allclose(out, ref, atol=1e-6, rtol=1e-6)

    # 2) Same functional with bf16 output: halves the dominant writeback bytes.
    out_bf16 = jax.block_until_ready(
        functional_module_pallas(normalize, x_u8, out_dtype=jnp.bfloat16))
    assert out_bf16.dtype == jnp.bfloat16
    assert jnp.allclose(out_bf16.astype(jnp.float32), ref, atol=4e-3, rtol=0)

    # 3) f32 functional on a size NOT divisible by 128 (trailing-dims view:
    #    (6, 2500) — no tail slice/concat, single HBM read + write).
    affine = lambda v: v * 2.0 + 1.0
    x_f32 = jax.random.uniform(k1, (2, 3, 50, 50), dtype=jnp.float32)
    out2 = jax.block_until_ready(functional_module_pallas(affine, x_f32))
    ref2 = affine(x_f32)
    assert out2.shape == ref2.shape and out2.dtype == ref2.dtype
    assert jnp.allclose(out2, ref2, atol=1e-6, rtol=1e-6)

    # 4) Larger input that exercises the multi-step (>=4 block) grid path.
    x_big = jax.random.uniform(k2, (8, 3, 128, 128), dtype=jnp.float32)
    out3 = jax.block_until_ready(functional_module_pallas(affine, x_big))
    assert jnp.allclose(out3, affine(x_big), atol=1e-6, rtol=1e-6)

    # 5) Degenerate tiny input (< 128 elements).
    neg = lambda v: -v
    x_tiny = jax.random.uniform(k3, (3, 5, 7), dtype=jnp.float32)
    out4 = jax.block_until_ready(functional_module_pallas(neg, x_tiny))
    assert jnp.allclose(out4, neg(x_tiny), atol=1e-6, rtol=1e-6)

    print("KERNEL_OK")
</pallas_src>

<mosaic_0001>
module attributes {stable_mosaic.version = 11 : i64} {
  func.func @kernel(%arg0: i32, %arg1: memref<1x2048xi8, #tpu.memory_space<vmem>>, %arg2: memref<1x2048xf32, #tpu.memory_space<vmem>>) attributes {dimension_semantics = [#tpu.dimension_semantics<parallel>], iteration_bounds = array<i64: 1>, scalar_prefetch = 0 : i64, scratch_operands = 0 : i64, tpu.core_type = #tpu.core_type<tc>, window_params = [{transform_indices = @transform_0, window_bounds = array<i64: 1, 2048>}, {transform_indices = @transform_1, window_bounds = array<i64: 1, 2048>}]} {
    %c0 = arith.constant 0 : index
    %c0_0 = arith.constant 0 : index
    %0 = vector.load %arg1[%c0, %c0_0] : memref<1x2048xi8, #tpu.memory_space<vmem>>, vector<1x2048xi8>
    %1 = arith.uitofp %0 : vector<1x2048xi8> to vector<1x2048xf32>
    %cst = arith.constant 0.00392156886 : f32
    %2 = vector.broadcast %cst : f32 to vector<1x2048xf32>
    %3 = arith.mulf %1, %2 : vector<1x2048xf32>
    %c0_1 = arith.constant 0 : index
    %c0_2 = arith.constant 0 : index
    %4 = vector.load %arg2[%c0_1, %c0_2] : memref<1x2048xf32, #tpu.memory_space<vmem>>, vector<1x2048xf32>
    tpu.vector_store %arg2[%c0_1, %c0_2], %3 {strides = array<i32>} : memref<1x2048xf32, #tpu.memory_space<vmem>>, vector<1x2048xf32>,
    return
  }
  func.func @transform_0(%arg0: i32) -> (i32, i32) {
    %c0_i32 = arith.constant 0 : i32
    %c0_i32_0 = arith.constant 0 : i32
    return %arg0, %c0_i32 : i32, i32
  }
  func.func @transform_1(%arg0: i32) -> (i32, i32) {
    %c0_i32 = arith.constant 0 : i32
    %c0_i32_0 = arith.constant 0 : i32
    return %arg0, %c0_i32 : i32, i32
  }
}

</mosaic_0001>

<bundles_post_ra>
// kernel: tpu_custom_call.1
= control target key start
LH: loop header
LB: loop body
LE: loop exit
PB: predicated region body
PF: predicated region fallthrough
CT: control target
= control target key end

     0   :  { %6 = vsyncpa [#allocation3], 0  ;;  %s260_s0 = inlined_call_operand.hbm [shape: u8[1,2048], index: 0, kind: input, shape index: {}]   ;;  %s261_s1 = inlined_call_operand.hbm [shape: f32[1,2048], index: 1, kind: output, shape index: {}]  }
   0x1   :  { %7 = vsyncpa [#allocation4], 0  ;;  %s223_s6 = smov [#allocation2]   ;;  %s175_s10 = scalar_lea.hbm %s260_s0, 256 }
   0x2   :  { %s14_s7 = sshll.u32 %s223_s6, 4  ;;  %p176_p0 = scmp.ne.s32.totalorder %s260_s0, %s175_s10  ;;  %s15_s7 = int_to_ptr.vmem [resolvable:$true] %s14_s7 }
   0x3   :  { %p179_p1 = scmp.lt.u32.totalorder %s175_s10, %s260_s0 }
   0x5   :  { %p181_p2 = pnand %p179_p1, %p176_p0 }
   0x7   :  { %184 = shalt.err (!%p181_p2)
}
   0x8   :  { %s185_s15 = scalar_lea.vmem %s15_s7, 256  ;;  %p190_p4 = scmp.lt.s32.totalorder %s15_s7, %s15_s7 }
   0x9   :  { %p186_p3 = scmp.ne.s32.totalorder %s15_s7, %s185_s15  ;;  %p191_p5 = scmp.lt.s32.totalorder %s185_s15, %s185_s15 }
   0xb   :  { %p192_p6 = por %p191_p5, %p190_p4 }
   0xd   :  { %p193_p7 = pnand %p192_p6, %p186_p3 }
   0xf   :  { %196 = shalt.err (!%p193_p7)
}
  0x10   :  { %17 = dma.hbm_to_vmem [thread:$0]  %s260_s0, 256, %s15_s7, [#allocation3]  }
  0x11   :  { %219 = dma.done.wait [#allocation3], 256  }
  0x12   :  { %220 = vsyncadd [#allocation3], 4294967040  ;;  %v66_v0 = vlaneseq  ;;  %v224_v1 = vmov 1966171168   ;;  %v21_v5 = vld [vmem:[#allocation2] sm:$0xff]  ;;  %v22_v7 = vld [vmem:[#allocation2 + $0x8] sm:$0xff] }
  0x13   :  { %v64_v2 = vunpack.c.l.s4 %v224_v1  ;;  %v23_v8 = vunpack.c.0.s8 %v21_v5  ;;  %v24_v9 = vunpack.c.1.s8 %v21_v5  ;;  %v25_v10 = vunpack.c.2.s8 %v21_v5  ;;  %s225_s0 = smov [#allocation5]  }
  0x14   :  { %v67_v4 = vshrl.u32 %v66_v0, 7  ;;  %v26_v11 = vunpack.c.3.s8 %v21_v5  ;;  %v27_v12 = vunpack.c.0.s8 %v22_v7  ;;  %v28_v13 = vunpack.c.1.s8 %v22_v7  ;;  %s163_s18 = sshll.u32 %s225_s0, 4  ;;  %s164_s18 = int_to_ptr.vmem [resolvable:$true] %s163_s18 }
  0x15   :  { %v65_v3 = vunpack.c.0.s8 %v64_v2  ;;  %v29_v14 = vunpack.c.2.s8 %v22_v7  ;;  %v30_v15 = vunpack.c.3.s8 %v22_v7  ;;  %v31_v16 = vand.u32 255, %v23_v8  ;;  %s197_s19 = scalar_lea.vmem %s164_s18, 256  ;;  %p202_p9 = scmp.lt.s32.totalorder %s164_s18, %s164_s18 }
  0x16   :  { %v32_v17 = vand.u32 255, %v24_v9  ;;  %v33_v18 = vand.u32 255, %v25_v10  ;;  %v34_v19 = vand.u32 255, %v26_v11  ;;  %v35_v20 = vand.u32 255, %v27_v12  ;;  %p198_p8 = scmp.ne.s32.totalorder %s164_s18, %s197_s19  ;;  %p203_p10 = scmp.lt.s32.totalorder %s197_s19, %s197_s19 }
  0x17   :  { %v68_v6 = vsub.s32 %v65_v3, %v67_v4  ;;  %v36_v21 = vand.u32 255, %v28_v13  ;;  %v37_v22 = vand.u32 255, %v29_v14  ;;  %v38_v23 = vand.u32 255, %v30_v15 }
  0x18   :  { %v39_v24 = vcvt.s32.f32 %v31_v16  ;;  %v40_v25 = vcvt.s32.f32 %v32_v17  ;;  %v41_v26 = vcvt.s32.f32 %v33_v18  ;;  %v42_v27 = vcvt.s32.f32 %v34_v19  ;;  %p204_p11 = por %p203_p10, %p202_p9 }
  0x19   :  { %v43_v28 = vcvt.s32.f32 %v35_v20  ;;  %v44_v29 = vcvt.s32.f32 %v36_v21  ;;  %v45_v30 = vcvt.s32.f32 %v37_v22  ;;  %v46_v31 = vcvt.s32.f32 %v38_v23 }
  0x1a   :  { %v47_v32 = vmul.f32 0.003921569, %v39_v24  ;;  %v48_v33 = vmul.f32 0.003921569, %v40_v25  ;;  %v49_v34 = vmul.f32 0.003921569, %v41_v26  ;;  %p205_p12 = pnand %p204_p11, %p198_p8 }
  0x1b   :  { %v50_v35 = vmul.f32 0.003921569, %v42_v27  ;;  %v51_v36 = vmul.f32 0.003921569, %v43_v28  ;;  %v52_v37 = vmul.f32 0.003921569, %v44_v29 }
  0x1c   :  { %v69_v38 = vrot.slane %v47_v32, %v68_v6  ;;  %v76_v39 = vrot.slane %v48_v33, %v68_v6  ;;  %v83_v40 = vrot.slane %v49_v34, %v68_v6  ;;  %v53_v41 = vmul.f32 0.003921569, %v45_v30 }
  0x1d   :  { %v90_v42 = vrot.slane %v50_v35, %v68_v6  ;;  %v54_v43 = vmul.f32 0.003921569, %v46_v31  ;;  %v114_v44 = vrot.slane %v51_v36, %v68_v6  ;;  %v121_v45 = vrot.slane %v52_v37, %v68_v6 }
  0x1e   :  { %v91_v46 = vcombine.low %v69_v38, %v76_v39  ;;  %v128_v47 = vrot.slane %v53_v41, %v68_v6 }
  0x1f   :  { %v92_v48 = vcombine.low %v83_v40, %v90_v42  ;;  %v135_v49 = vrot.slane %v54_v43, %v68_v6  ;;  %v136_v50 = vcombine.low %v114_v44, %v121_v45 }
  0x20   :  { %v99_v51 = vrot.slane %v91_v46, %v68_v6 }
  0x21   :  { %v106_v52 = vrot.slane %v92_v48, %v68_v6  ;;  %v137_v53 = vcombine.low %v128_v47, %v135_v49  ;;  %v144_v54 = vrot.slane %v136_v50, %v68_v6 }
  0x23   :  { %v107_v55 = vcombine.low %v99_v51, %v106_v52  ;;  %v151_v56 = vrot.slane %v137_v53, %v68_v6 }
  0x25   :  { %155 = vst [vmem:[#allocation5] sm:$0xff] %v107_v55  ;;  %v152_v57 = vcombine.low %v144_v54, %v151_v56 }
  0x27   :  { %156 = vst [vmem:[#allocation5 + $0x8] sm:$0xff] %v152_v57 }
  0x28   :  { %208 = shalt.err (!%p205_p12)
}
  0x29   :  { %s209_s22 = scalar_lea.hbm %s261_s1, 256 }
  0x2a   :  { %p210_p13 = scmp.ne.s32.totalorder %s261_s1, %s209_s22  ;;  %p213_p0 = scmp.lt.u32.totalorder %s209_s22, %s261_s1 }
  0x2c   :  { %p215_p1 = pnand %p213_p0, %p210_p13 }
  0x2e   :  { %218 = shalt.err (!%p215_p1)
}
  0x2f   :  { %166 = dma.vmem_to_hbm [thread:$0]  %s164_s18, 256, %s261_s1, [#allocation4]  }
  0x30   :  { %221 = dma.done.wait [#allocation4], 256  }
  0x31   :  { %222 = vsyncadd [#allocation4], 4294967040 }
  0x32   :  { %170 = vsyncpa [#allocation3], 1 }
  0x33   :  { %171 = vsyncpa [#allocation4], 1 }

</bundles_post_ra>
